<compile_context>
chip_gen: v7x
topology: tpu7x:2x2x1
jax: 0.10.0
libtpu: 0.0.40
codegen_flags: <defaults>
</compile_context>

<pallas_src>
import jax
import jax.numpy as jnp
from jax.experimental import pallas as pl
from jax.experimental.pallas import tpu as pltpu


def _make_listadd_kernel(k, k_bs_const):
    """Build a kernel for a fixed list length k with K*bs folded in.

    k_bs_const is kept as a plain Python float so it lowers as a scalar
    literal (captured jnp arrays are not allowed in pallas kernels).
    """
    k_bs = float(k_bs_const)

    def kernel(*refs):
        # refs layout: x_0 .. x_{k-1}, y, z, y1, z1, s
        x_refs = refs[:k]
        y_ref = refs[k]
        z_ref = refs[k + 1]
        y1_ref, z1_ref, s_ref = refs[k + 2], refs[k + 3], refs[k + 4]

        y = y_ref[...].astype(jnp.float32)
        z = z_ref[...].astype(jnp.float32)

        # y1 = y + sum_i(x_i) + K*bs  (unrolled adds; literal constant)
        acc = y + k_bs
        for xr in x_refs:
            acc = acc + xr[...].astype(jnp.float32)

        z1 = z + y

        y1_ref[...] = acc.astype(y1_ref.dtype)
        z1_ref[...] = z1.astype(z1_ref.dtype)
        s_ref[...] = (acc + z1).astype(s_ref.dtype)

    return kernel


def list_add(x_list, y, z, bs=0.1):
    """Pallas implementation of ListAdd.forward.

    x_list: list of arrays, each same shape as y and z.
    Returns (x1, [y1, z1], y1 + z1) with x1 a shallow copy of the list.
    """
    orig_shape = y.shape
    out_dtype = y.dtype
    n_elem = y.size
    lanes = 128
    sublanes = 8
    k = len(x_list)
    itemsize = jnp.dtype(out_dtype).itemsize

    # Flatten and pad to a multiple of (8, 128) so the slab is lane-dense and
    # tile-aligned for any shape (no hard restriction on element count).
    pad_unit = sublanes * lanes
    n_pad = (-n_elem) % pad_unit
    n_total = n_elem + n_pad
    rows = n_total // lanes

    def to_slab(a):
        a = a.reshape(-1)
        if n_pad:
            a = jnp.pad(a, (0, n_pad))
        return a.reshape(rows, lanes)

    xs2 = [to_slab(xi) for xi in x_list]
    y2 = to_slab(y)
    z2 = to_slab(z)

    # --- Row-tile selection, budgeted against VMEM ---------------------------
    # Per grid step: (k+5) arrays, each double-buffered, each (tr, 128).
    vmem_budget = 12 * 1024 * 1024  # fits under 16 MiB (v5e) / 32 MiB scoped defaults
    bytes_per_row = (k + 5) * 2 * lanes * itemsize
    tr_cap = max(sublanes, (vmem_budget // bytes_per_row) // sublanes * sublanes)

    # Keep at least ~4 grid steps on large shapes so v7x's two TensorCores
    # both get work and the DMA pipeline stays overlapped.
    min_steps = 4
    if rows >= min_steps * sublanes:
        per_step_cap = max(sublanes, (rows // min_steps) // sublanes * sublanes)
        tr_cap = min(tr_cap, per_step_cap)

    tr = min(rows, tr_cap)
    grid = (pl.cdiv(rows, tr),)

    # Explicit VMEM limit: computed footprint plus headroom (bounded sanely).
    footprint = (k + 5) * 2 * tr * lanes * itemsize
    vmem_limit = int(min(max(footprint * 2, 16 * 1024 * 1024), 48 * 1024 * 1024))

    tile_spec = pl.BlockSpec((tr, lanes), lambda i: (i, 0))
    out_shape = jax.ShapeDtypeStruct((rows, lanes), out_dtype)

    kernel = _make_listadd_kernel(k, k * bs)

    y1, z1, s = pl.pallas_call(
        kernel,
        out_shape=(out_shape, out_shape, out_shape),
        grid=grid,
        in_specs=[tile_spec] * (k + 2),          # x_0..x_{k-1}, y, z
        out_specs=(tile_spec, tile_spec, tile_spec),
        compiler_params=pltpu.CompilerParams(
            dimension_semantics=("parallel",),
            vmem_limit_bytes=vmem_limit,
        ),
    )(*xs2, y2, z2)

    def from_slab(a):
        a = a.reshape(-1)
        if n_pad:
            a = a[:n_elem]
        return a.reshape(orig_shape)

    y1 = from_slab(y1)
    z1 = from_slab(z1)
    s = from_slab(s)
    x1 = list(x_list)  # x.copy() — shallow list copy, tensors untouched
    return (x1, [y1, z1], s)


if __name__ == "__main__":
    key = jax.random.PRNGKey(0)
    k_x0, k_x1, k_x2, k_y, k_z = jax.random.split(key, 5)

    shape = (2, 4, 16, 16)  # NCHW
    x = [
        jax.random.normal(k_x0, shape, dtype=jnp.float32),
        jax.random.normal(k_x1, shape, dtype=jnp.float32),
        jax.random.normal(k_x2, shape, dtype=jnp.float32),
    ]
    y = jax.random.normal(k_y, shape, dtype=jnp.float32)
    z = jax.random.normal(k_z, shape, dtype=jnp.float32)
    bs = 0.1

    x1, (y1, z1), s = list_add(x, y, z, bs)
    jax.block_until_ready((y1, z1, s))

    # Reference (pure JAX) check of semantics.
    y1_ref = y
    for xi in x:
        y1_ref = y1_ref + xi + bs
    z1_ref = z + y
    s_ref = y1_ref + z1_ref

    assert len(x1) == len(x) and all((a is b) for a, b in zip(x1, x))
    assert jnp.allclose(y1, y1_ref, atol=1e-5)
    assert jnp.allclose(z1, z1_ref, atol=1e-5)
    assert jnp.allclose(s, s_ref, atol=1e-5)

    print("KERNEL_OK")
</pallas_src>

<mosaic_0001>
module attributes {stable_mosaic.version = 11 : i64} {
  func.func @kernel(%arg0: i32, %arg1: memref<16x128xf32, #tpu.memory_space<vmem>>, %arg2: memref<16x128xf32, #tpu.memory_space<vmem>>, %arg3: memref<16x128xf32, #tpu.memory_space<vmem>>, %arg4: memref<16x128xf32, #tpu.memory_space<vmem>>, %arg5: memref<16x128xf32, #tpu.memory_space<vmem>>, %arg6: memref<16x128xf32, #tpu.memory_space<vmem>>, %arg7: memref<16x128xf32, #tpu.memory_space<vmem>>, %arg8: memref<16x128xf32, #tpu.memory_space<vmem>>) attributes {dimension_semantics = [#tpu.dimension_semantics<parallel>], iteration_bounds = array<i64: 1>, scalar_prefetch = 0 : i64, scratch_operands = 0 : i64, tpu.core_type = #tpu.core_type<tc>, window_params = [{transform_indices = @transform_0, window_bounds = array<i64: 16, 128>}, {transform_indices = @transform_1, window_bounds = array<i64: 16, 128>}, {transform_indices = @transform_2, window_bounds = array<i64: 16, 128>}, {transform_indices = @transform_3, window_bounds = array<i64: 16, 128>}, {transform_indices = @transform_4, window_bounds = array<i64: 16, 128>}, {transform_indices = @transform_5, window_bounds = array<i64: 16, 128>}, {transform_indices = @transform_6, window_bounds = array<i64: 16, 128>}, {transform_indices = @transform_7, window_bounds = array<i64: 16, 128>}]} {
    %c0 = arith.constant 0 : index
    %c0_0 = arith.constant 0 : index
    %0 = vector.load %arg4[%c0, %c0_0] : memref<16x128xf32, #tpu.memory_space<vmem>>, vector<16x128xf32>
    %c0_1 = arith.constant 0 : index
    %c0_2 = arith.constant 0 : index
    %1 = vector.load %arg5[%c0_1, %c0_2] : memref<16x128xf32, #tpu.memory_space<vmem>>, vector<16x128xf32>
    %cst = arith.constant 3.000000e-01 : f32
    %2 = vector.broadcast %cst : f32 to vector<16x128xf32>
    %3 = arith.addf %0, %2 : vector<16x128xf32>
    %c0_3 = arith.constant 0 : index
    %c0_4 = arith.constant 0 : index
    %4 = vector.load %arg1[%c0_3, %c0_4] : memref<16x128xf32, #tpu.memory_space<vmem>>, vector<16x128xf32>
    %5 = arith.addf %3, %4 : vector<16x128xf32>
    %c0_5 = arith.constant 0 : index
    %c0_6 = arith.constant 0 : index
    %6 = vector.load %arg2[%c0_5, %c0_6] : memref<16x128xf32, #tpu.memory_space<vmem>>, vector<16x128xf32>
    %7 = arith.addf %5, %6 : vector<16x128xf32>
    %c0_7 = arith.constant 0 : index
    %c0_8 = arith.constant 0 : index
    %8 = vector.load %arg3[%c0_7, %c0_8] : memref<16x128xf32, #tpu.memory_space<vmem>>, vector<16x128xf32>
    %9 = arith.addf %7, %8 : vector<16x128xf32>
    %10 = arith.addf %1, %0 : vector<16x128xf32>
    %c0_9 = arith.constant 0 : index
    %c0_10 = arith.constant 0 : index
    %11 = vector.load %arg6[%c0_9, %c0_10] : memref<16x128xf32, #tpu.memory_space<vmem>>, vector<16x128xf32>
    tpu.vector_store %arg6[%c0_9, %c0_10], %9 {strides = array<i32>} : memref<16x128xf32, #tpu.memory_space<vmem>>, vector<16x128xf32>,
    %c0_11 = arith.constant 0 : index
    %c0_12 = arith.constant 0 : index
    %12 = vector.load %arg7[%c0_11, %c0_12] : memref<16x128xf32, #tpu.memory_space<vmem>>, vector<16x128xf32>
    tpu.vector_store %arg7[%c0_11, %c0_12], %10 {strides = array<i32>} : memref<16x128xf32, #tpu.memory_space<vmem>>, vector<16x128xf32>,
    %13 = arith.addf %9, %10 : vector<16x128xf32>
    %c0_13 = arith.constant 0 : index
    %c0_14 = arith.constant 0 : index
    %14 = vector.load %arg8[%c0_13, %c0_14] : memref<16x128xf32, #tpu.memory_space<vmem>>, vector<16x128xf32>
    tpu.vector_store %arg8[%c0_13, %c0_14], %13 {strides = array<i32>} : memref<16x128xf32, #tpu.memory_space<vmem>>, vector<16x128xf32>,
    return
  }
  func.func @transform_0(%arg0: i32) -> (i32, i32) {
    %c0_i32 = arith.constant 0 : i32
    %c0_i32_0 = arith.constant 0 : i32
    return %arg0, %c0_i32 : i32, i32
  }
  func.func @transform_1(%arg0: i32) -> (i32, i32) {
    %c0_i32 = arith.constant 0 : i32
    %c0_i32_0 = arith.constant 0 : i32
    return %arg0, %c0_i32 : i32, i32
  }
  func.func @transform_2(%arg0: i32) -> (i32, i32) {
    %c0_i32 = arith.constant 0 : i32
    %c0_i32_0 = arith.constant 0 : i32
    return %arg0, %c0_i32 : i32, i32
  }
  func.func @transform_3(%arg0: i32) -> (i32, i32) {
    %c0_i32 = arith.constant 0 : i32
    %c0_i32_0 = arith.constant 0 : i32
    return %arg0, %c0_i32 : i32, i32
  }
  func.func @transform_4(%arg0: i32) -> (i32, i32) {
    %c0_i32 = arith.constant 0 : i32
    %c0_i32_0 = arith.constant 0 : i32
    return %arg0, %c0_i32 : i32, i32
  }
  func.func @transform_5(%arg0: i32) -> (i32, i32) {
    %c0_i32 = arith.constant 0 : i32
    %c0_i32_0 = arith.constant 0 : i32
    return %arg0, %c0_i32 : i32, i32
  }
  func.func @transform_6(%arg0: i32) -> (i32, i32) {
    %c0_i32 = arith.constant 0 : i32
    %c0_i32_0 = arith.constant 0 : i32
    return %arg0, %c0_i32 : i32, i32
  }
  func.func @transform_7(%arg0: i32) -> (i32, i32) {
    %c0_i32 = arith.constant 0 : i32
    %c0_i32_0 = arith.constant 0 : i32
    return %arg0, %c0_i32 : i32, i32
  }
}

</mosaic_0001>

<bundles_post_ra>
// kernel: tpu_custom_call.1
= control target key start
LH: loop header
LB: loop body
LE: loop exit
PB: predicated region body
PF: predicated region fallthrough
CT: control target
= control target key end

     0   :  { %13 = vsyncpa [#allocation3], 0  ;;  %s558_s0 = inlined_call_operand.hbm [shape: f32[16,128], index: 0, kind: input, shape index: {}]   ;;  %s559_s1 = inlined_call_operand.hbm [shape: f32[16,128], index: 1, kind: input, shape index: {}]   ;;  %s560_s2 = inlined_call_operand.hbm [shape: f32[16,128], index: 2, kind: input, shape index: {}]   ;;  %s561_s3 = inlined_call_operand.hbm [shape: f32[16,128], index: 3, kind: input, shape index: {}]   ;;  %s562_s4 = inlined_call_operand.hbm [shape: f32[16,128], index: 4, kind: input, shape index: {}]   ;;  %s563_s5 = inlined_call_operand.hbm [shape: f32[16,128], index: 5, kind: output, shape index: {0}]   ;;  %s564_s6 = inlined_call_operand.hbm [shape: f32[16,128], index: 6, kind: output, shape index: {1}]   ;;  %s565_s7 = inlined_call_operand.hbm [shape: f32[16,128], index: 7, kind: output, shape index: {2}]  }
   0x1   :  { %14 = vsyncpa [#allocation6], 0 }
   0x2   :  { %15 = vsyncpa [#allocation9], 0 }
   0x3   :  { %16 = vsyncpa [#allocation4], 0 }
   0x4   :  { %17 = vsyncpa [#allocation13], 0  ;;  %s367_s24 = smov [#allocation5]   ;;  %s368_s26 = smov [#allocation8]  }
   0x5   :  { %s35_s25 = sshll.u32 %s367_s24, 4  ;;  %s59_s27 = sshll.u32 %s368_s26, 4  ;;  %s36_s25 = int_to_ptr.vmem [resolvable:$true] %s35_s25  ;;  %s417_s27 = int_to_ptr.vmem [resolvable:$true] %s59_s27 }
   0x6   :  { %s181_s30 = scalar_lea.hbm %s559_s1, 256 }
   0x7   :  { %p182_p0 = scmp.ne.s32.totalorder %s559_s1, %s181_s30  ;;  %p185_p1 = scmp.lt.u32.totalorder %s181_s30, %s559_s1 }
   0x9   :  { %p187_p2 = pnand %p185_p1, %p182_p0 }
   0xb   :  { %190 = shalt.err (!%p187_p2)
}
   0xc   :  { %s191_s12 = scalar_lea.vmem %s36_s25, 256  ;;  %p196_p4 = scmp.lt.s32.totalorder %s36_s25, %s36_s25 }
   0xd   :  { %p192_p3 = scmp.ne.s32.totalorder %s36_s25, %s191_s12  ;;  %p197_p5 = scmp.lt.s32.totalorder %s191_s12, %s191_s12 }
   0xf   :  { %p198_p6 = por %p197_p5, %p196_p4 }
  0x11   :  { %p199_p7 = pnand %p198_p6, %p192_p3 }
  0x13   :  { %202 = shalt.err (!%p199_p7)
}
  0x14   :  { %s369_s13 = smov 128   ;;  %s370_s14 = smov 8  }
  0x15   :  { %41 = dma.hbm_to_vmem [thread:$0]  %s559_s1, 256, %s36_s25, [#allocation6], %s369_s13, %s369_s13, %s370_s14  }
  0x16   :  { %s203_s19 = scalar_lea.hbm %s561_s3, 256 }
  0x17   :  { %p204_p8 = scmp.ne.s32.totalorder %s561_s3, %s203_s19  ;;  %p207_p9 = scmp.lt.u32.totalorder %s203_s19, %s561_s3 }
  0x19   :  { %p209_p10 = pnand %p207_p9, %p204_p8 }
  0x1b   :  { %212 = shalt.err (!%p209_p10)
}
  0x1c   :  { %s213_s24 = scalar_lea.vmem %s417_s27, 256  ;;  %p218_p12 = scmp.lt.s32.totalorder %s417_s27, %s417_s27 }
  0x1d   :  { %p214_p11 = scmp.ne.s32.totalorder %s417_s27, %s213_s24  ;;  %p219_p13 = scmp.lt.s32.totalorder %s213_s24, %s213_s24 }
  0x1f   :  { %p220_p0 = por %p219_p13, %p218_p12 }
  0x21   :  { %p221_p1 = pnand %p220_p0, %p214_p11 }
  0x23   :  { %224 = shalt.err (!%p221_p1)
}
  0x24   :  { %65 = dma.hbm_to_vmem [thread:$0]  %s561_s3, 256, %s417_s27, [#allocation9], %s369_s13, %s369_s13, %s370_s14  }
  0x25   :  { %s371_s26 = smov [#allocation2]   ;;  %s372_s29 = smov [#allocation7]  }
  0x26   :  { %s23_s28 = sshll.u32 %s371_s26, 4  ;;  %s47_s30 = sshll.u32 %s372_s29, 4  ;;  %s24_s28 = int_to_ptr.vmem [resolvable:$true] %s23_s28  ;;  %s454_s30 = int_to_ptr.vmem [resolvable:$true] %s47_s30 }
  0x27   :  { %s225_s10 = scalar_lea.hbm %s558_s0, 256 }
  0x28   :  { %p226_p2 = scmp.ne.s32.totalorder %s558_s0, %s225_s10  ;;  %p229_p3 = scmp.lt.u32.totalorder %s225_s10, %s558_s0 }
  0x2a   :  { %p231_p4 = pnand %p229_p3, %p226_p2 }
  0x2c   :  { %234 = shalt.err (!%p231_p4)
}
  0x2d   :  { %s235_s3 = scalar_lea.vmem %s24_s28, 256  ;;  %p240_p6 = scmp.lt.s32.totalorder %s24_s28, %s24_s28 }
  0x2e   :  { %p236_p5 = scmp.ne.s32.totalorder %s24_s28, %s235_s3  ;;  %p241_p7 = scmp.lt.s32.totalorder %s235_s3, %s235_s3 }
  0x30   :  { %p242_p8 = por %p241_p7, %p240_p6 }
  0x32   :  { %p243_p9 = pnand %p242_p8, %p236_p5 }
  0x34   :  { %246 = shalt.err (!%p243_p9)
}
  0x35   :  { %29 = dma.hbm_to_vmem [thread:$0]  %s558_s0, 256, %s24_s28, [#allocation3], %s369_s13, %s369_s13, %s370_s14  }
  0x36   :  { %s247_s20 = scalar_lea.hbm %s560_s2, 256 }
  0x37   :  { %p248_p10 = scmp.ne.s32.totalorder %s560_s2, %s247_s20  ;;  %p251_p11 = scmp.lt.u32.totalorder %s247_s20, %s560_s2 }
  0x39   :  { %p253_p12 = pnand %p251_p11, %p248_p10 }
  0x3b   :  { %256 = shalt.err (!%p253_p12)
}
  0x3c   :  { %s257_s1 = scalar_lea.vmem %s454_s30, 256  ;;  %p262_p0 = scmp.lt.s32.totalorder %s454_s30, %s454_s30 }
  0x3d   :  { %p258_p13 = scmp.ne.s32.totalorder %s454_s30, %s257_s1  ;;  %p263_p1 = scmp.lt.s32.totalorder %s257_s1, %s257_s1 }
  0x3f   :  { %p264_p2 = por %p263_p1, %p262_p0 }
  0x41   :  { %p265_p3 = pnand %p264_p2, %p258_p13 }
  0x43   :  { %268 = shalt.err (!%p265_p3)
}
  0x44   :  { %53 = dma.hbm_to_vmem [thread:$0]  %s560_s2, 256, %s454_s30, [#allocation6], %s369_s13, %s369_s13, %s370_s14  }
  0x45   :  { %s373_s26 = smov [#allocation10]   ;;  %s269_s9 = scalar_lea.hbm %s562_s4, 256 }
  0x46   :  { %s71_s28 = sshll.u32 %s373_s26, 4  ;;  %p270_p4 = scmp.ne.s32.totalorder %s562_s4, %s269_s9  ;;  %s72_s28 = int_to_ptr.vmem [resolvable:$true] %s71_s28 }
  0x47   :  { %p273_p5 = scmp.lt.u32.totalorder %s269_s9, %s562_s4 }
  0x49   :  { %p275_p6 = pnand %p273_p5, %p270_p4 }
  0x4b   :  { %278 = shalt.err (!%p275_p6)
}
  0x4c   :  { %s279_s16 = scalar_lea.vmem %s72_s28, 256  ;;  %p284_p8 = scmp.lt.s32.totalorder %s72_s28, %s72_s28 }
  0x4d   :  { %p280_p7 = scmp.ne.s32.totalorder %s72_s28, %s279_s16  ;;  %p285_p9 = scmp.lt.s32.totalorder %s279_s16, %s279_s16 }
  0x4f   :  { %p286_p10 = por %p285_p9, %p284_p8 }
  0x51   :  { %p287_p11 = pnand %p286_p10, %p280_p7 }
  0x53   :  { %290 = shalt.err (!%p287_p11)
}
  0x54   :  { %77 = dma.hbm_to_vmem [thread:$0]  %s562_s4, 256, %s72_s28, [#allocation9], %s369_s13, %s369_s13, %s370_s14  }
  0x55   :  { %357 = dma.done.wait [#allocation3], 256  }
  0x56   :  { %358 = vsyncadd [#allocation3], 4294967040 }
  0x57   :  { %359 = dma.done.wait [#allocation6], 512  }
  0x58   :  { %360 = vsyncadd [#allocation6], 4294966784 }
  0x59   :  { %361 = dma.done.wait [#allocation9], 512  }
  0x5a   :  { %362 = vsyncadd [#allocation9], 4294966784  ;;  %s374_s3 = smov [#allocation12]   ;;  %v93_v0 = vld [vmem:[#allocation8] sm:$0xff]  ;;  %v95_v1 = vld [vmem:[#allocation10] sm:$0xff]  ;;  %s375_s4 = smov [#allocation11]  }
  0x5b   :  { %s138_s27 = sshll.u32 %s374_s3, 4  ;;  %v94_v2 = vld [vmem:[#allocation8 + $0x8] sm:$0xff]  ;;  %v97_v3 = vadd.f32 0.3, %v93_v0  ;;  %v111_v4 = vadd.f32 %v95_v1, %v93_v0  ;;  %v96_v5 = vld [vmem:[#allocation10 + $0x8] sm:$0xff]  ;;  %v99_v7 = vld [vmem:[#allocation2] sm:$0xff]  ;;  %s139_s27 = int_to_ptr.vmem [resolvable:$true] %s138_s27 }
  0x5c   :  { %v98_v6 = vadd.f32 0.3, %v94_v2  ;;  %v112_v8 = vadd.f32 %v96_v5, %v94_v2  ;;  %v103_v9 = vld [vmem:[#allocation5] sm:$0xff]  ;;  %v100_v10 = vld [vmem:[#allocation2 + $0x8] sm:$0xff]  ;;  %v104_v13 = vld [vmem:[#allocation5 + $0x8] sm:$0xff]  ;;  %s126_s17 = sshll.u32 %s375_s4, 4  ;;  %p296_p13 = scmp.lt.s32.totalorder %s139_s27, %s139_s27  ;;  %s127_s17 = int_to_ptr.vmem [resolvable:$true] %s126_s17 }
  0x5d   :  { %115 = vst [vmem:[#allocation12] sm:$0xff] %v111_v4  ;;  %v101_v11 = vadd.f32 %v99_v7, %v97_v3  ;;  %v107_v14 = vld [vmem:[#allocation7] sm:$0xff]  ;;  %v108_v15 = vld [vmem:[#allocation7 + $0x8] sm:$0xff]  ;;  %s291_s18 = scalar_lea.vmem %s139_s27, 256 }
  0x5e   :  { %v102_v12 = vadd.f32 %v100_v10, %v98_v6  ;;  %116 = vst [vmem:[#allocation12 + $0x8] sm:$0xff] %v112_v8  ;;  %p292_p12 = scmp.ne.s32.totalorder %s139_s27, %s291_s18  ;;  %p297_p0 = scmp.lt.s32.totalorder %s291_s18, %s291_s18 }
  0x5f   :  { %v105_v16 = vadd.f32 %v103_v9, %v101_v11 }
  0x60   :  { %v106_v17 = vadd.f32 %v104_v13, %v102_v12  ;;  %p298_p1 = por %p297_p0, %p296_p13 }
  0x62   :  { %p299_p2 = pnand %p298_p1, %p292_p12 }
  0x64   :  { %302 = shalt.err (!%p299_p2)
}
  0x65   :  { %s303_s21 = scalar_lea.hbm %s564_s6, 256 }
  0x66   :  { %p304_p3 = scmp.ne.s32.totalorder %s564_s6, %s303_s21  ;;  %p307_p4 = scmp.lt.u32.totalorder %s303_s21, %s564_s6 }
  0x68   :  { %p309_p5 = pnand %p307_p4, %p304_p3 }
  0x6a   :  { %312 = shalt.err (!%p309_p5)
}
  0x6b   :  { %144 = dma.vmem_to_hbm [thread:$0]  %s139_s27, 256, %s564_s6, [#allocation13], %s369_s13, %s369_s13, %s370_s14   ;;  %v109_v18 = vadd.f32 %v107_v14, %v105_v16  ;;  %v110_v19 = vadd.f32 %v108_v15, %v106_v17 }
  0x6c   :  { %s376_s26 = smov [#allocation14]   ;;  %s313_s29 = scalar_lea.vmem %s127_s17, 256 }
  0x6d   :  { %s150_s28 = sshll.u32 %s376_s26, 4  ;;  %113 = vst [vmem:[#allocation11] sm:$0xff] %v109_v18  ;;  %114 = vst [vmem:[#allocation11 + $0x8] sm:$0xff] %v110_v19  ;;  %v117_v20 = vadd.f32 %v111_v4, %v109_v18  ;;  %v118_v21 = vadd.f32 %v112_v8, %v110_v19  ;;  %p314_p6 = scmp.ne.s32.totalorder %s127_s17, %s313_s29  ;;  %s521_s28 = int_to_ptr.vmem [resolvable:$true] %s150_s28 }
  0x6e   :  { %p318_p7 = scmp.lt.s32.totalorder %s127_s17, %s127_s17  ;;  %p319_p8 = scmp.lt.s32.totalorder %s313_s29, %s313_s29 }
  0x70   :  { %p320_p9 = por %p319_p8, %p318_p7 }
  0x72   :  { %p321_p10 = pnand %p320_p9, %p314_p6 }
  0x74   :  { %324 = shalt.err (!%p321_p10)
}
  0x75   :  { %s325_s9 = scalar_lea.hbm %s563_s5, 256 }
  0x76   :  { %p326_p11 = scmp.ne.s32.totalorder %s563_s5, %s325_s9  ;;  %p329_p12 = scmp.lt.u32.totalorder %s325_s9, %s563_s5 }
  0x78   :  { %p331_p13 = pnand %p329_p12, %p326_p11 }
  0x7a   :  { %334 = shalt.err (!%p331_p13)
}
  0x7b   :  { %132 = dma.vmem_to_hbm [thread:$0]  %s127_s17, 256, %s563_s5, [#allocation4], %s369_s13, %s369_s13, %s370_s14   ;;  %119 = vst [vmem:[#allocation14] sm:$0xff] %v117_v20  ;;  %120 = vst [vmem:[#allocation14 + $0x8] sm:$0xff] %v118_v21 }
  0x7c   :  { %s335_s30 = scalar_lea.vmem %s521_s28, 256  ;;  %p340_p1 = scmp.lt.s32.totalorder %s521_s28, %s521_s28 }
  0x7d   :  { %p336_p0 = scmp.ne.s32.totalorder %s521_s28, %s335_s30  ;;  %p341_p2 = scmp.lt.s32.totalorder %s335_s30, %s335_s30 }
  0x7f   :  { %p342_p3 = por %p341_p2, %p340_p1 }
  0x81   :  { %p343_p4 = pnand %p342_p3, %p336_p0 }
  0x83   :  { %346 = shalt.err (!%p343_p4)
}
  0x84   :  { %s347_s4 = scalar_lea.hbm %s565_s7, 256 }
  0x85   :  { %p348_p5 = scmp.ne.s32.totalorder %s565_s7, %s347_s4  ;;  %p351_p6 = scmp.lt.u32.totalorder %s347_s4, %s565_s7 }
  0x87   :  { %p353_p7 = pnand %p351_p6, %p348_p5 }
  0x89   :  { %356 = shalt.err (!%p353_p7)
}
  0x8a   :  { %156 = dma.vmem_to_hbm [thread:$0]  %s521_s28, 256, %s565_s7, [#allocation13], %s369_s13, %s369_s13, %s370_s14  }
  0x8b   :  { %363 = dma.done.wait [#allocation4], 256  }
  0x8c   :  { %364 = vsyncadd [#allocation4], 4294967040 }
  0x8d   :  { %365 = dma.done.wait [#allocation13], 512  }
  0x8e   :  { %366 = vsyncadd [#allocation13], 4294966784 }
  0x8f   :  { %166 = vsyncpa [#allocation3], 1 }
  0x90   :  { %167 = vsyncpa [#allocation6], 1 }
  0x91   :  { %168 = vsyncpa [#allocation9], 1 }
  0x92   :  { %169 = vsyncpa [#allocation4], 1 }
  0x93   :  { %170 = vsyncpa [#allocation13], 1 }

</bundles_post_ra>
